<compile_context>
chip_gen: v7x
topology: tpu7x:2x2x1
jax: 0.10.0
libtpu: 0.0.40
codegen_flags: <defaults>
</compile_context>

<pallas_src>
import functools

import jax
import jax.numpy as jnp
from jax import lax
from jax.experimental import pallas as pl
from jax.experimental.pallas import tpu as pltpu


def _round_up(a, m):
    return (a + m - 1) // m * m


def _adafm_tile(x, w, gamma, beta, bias):
    """out_tile = (x @ w.T) * gamma + rowsum(x) * beta + bias  (f32)."""
    acc = lax.dot_general(
        x, w,
        dimension_numbers=(((1,), (1,)), ((), ())),
        preferred_element_type=jnp.float32)                    # (tm, tn)
    xsum = jnp.sum(x.astype(jnp.float32), axis=1, keepdims=True)  # (tm, 1)
    return acc * gamma + xsum * beta + bias


def adafm_fc_kernel_single_k(x_ref, w_ref, gamma_ref, beta_ref, b_ref, bi_ref,
                             o_ref):
    """K fits in one tile: compute and store directly, no scratch."""
    out = _adafm_tile(x_ref[...], w_ref[...],
                      gamma_ref[...], beta_ref[...],
                      b_ref[...] + bi_ref[...])
    o_ref[...] = out.astype(o_ref.dtype)


def adafm_fc_kernel_multi_k(x_ref, w_ref, gamma_ref, beta_ref, b_ref, bi_ref,
                            o_ref, acc_ref, xsum_ref):
    """K-reduction across the last grid axis with f32 VMEM accumulators."""
    k = pl.program_id(2)

    @pl.when(k == 0)
    def _init():
        acc_ref[...] = jnp.zeros_like(acc_ref)
        xsum_ref[...] = jnp.zeros_like(xsum_ref)

    x = x_ref[...]                                   # (tm, tk)
    acc_ref[...] += lax.dot_general(
        x, w_ref[...],
        dimension_numbers=(((1,), (1,)), ((), ())),
        preferred_element_type=jnp.float32)
    xsum_ref[...] += jnp.sum(x.astype(jnp.float32), axis=1, keepdims=True)

    @pl.when(k == pl.num_programs(2) - 1)
    def _finalize():
        bias = b_ref[...] + bi_ref[...]              # (1, tn), folded once
        out = (acc_ref[...] * gamma_ref[...]
               + xsum_ref[...] * beta_ref[...]
               + bias)
        o_ref[...] = out.astype(o_ref.dtype)


def adafm_fc_forward(x, W, gamma, beta, b, b_i, *,
                     tm=256, tn=256, tk=512, compute_dtype=None):
    """out = x @ (W.T * gamma + beta) + b + b_i as a tiled Pallas TPU kernel.

    compute_dtype: optional dtype (e.g. jnp.bfloat16) for the MXU operands
    (x, W). Accumulation and gamma/beta/bias application stay in float32.
    """
    # TODO(synk): for tiny problems (e.g. 4x32x16) the pallas_call fixed cost
    # dominates; callers may prefer to let XLA fuse the expression directly or
    # batch many AdaFM_fc heads into one padded invocation.
    N, K = x.shape
    C, Kw = W.shape
    assert K == Kw, (K, Kw)

    if compute_dtype is not None:
        x = x.astype(compute_dtype)
        W = W.astype(compute_dtype)

    # Shrink tiles to the (padded) problem, keeping MXU/vreg-friendly multiples.
    # tm multiple of 16 (bf16 sublane packing), tn/tk multiples of 128 (lanes).
    tm = min(tm, _round_up(N, 16))
    tn = min(tn, _round_up(C, 128))
    tk = min(tk, _round_up(K, 128))

    Np = _round_up(N, tm)
    Cp = _round_up(C, tn)
    Kp = _round_up(K, tk)

    if (Np, Kp) != (N, K):
        x = jnp.pad(x, ((0, Np - N), (0, Kp - K)))
    if (Cp, Kp) != (C, K):
        W = jnp.pad(W, ((0, Cp - C), (0, Kp - K)))

    def _prep_vec(v):
        v = jnp.asarray(v, jnp.float32).reshape(1, -1)
        if v.shape[1] != Cp:
            v = jnp.pad(v, ((0, 0), (0, Cp - v.shape[1])))
        return v

    gamma, beta, b, b_i = map(_prep_vec, (gamma, beta, b, b_i))

    nk = Kp // tk
    out_shape = jax.ShapeDtypeStruct((Np, Cp), jnp.float32)

    if nk == 1:
        # Fast path: no K reduction -> 2-D grid, no scratch, no pl.when.
        grid = (Np // tm, Cp // tn)
        out = pl.pallas_call(
            adafm_fc_kernel_single_k,
            out_shape=out_shape,
            grid_spec=pltpu.PrefetchScalarGridSpec(
                num_scalar_prefetch=0,
                grid=grid,
                in_specs=[
                    pl.BlockSpec((tm, tk), lambda i, j: (i, 0)),   # x
                    pl.BlockSpec((tn, tk), lambda i, j: (j, 0)),   # W (as stored)
                    pl.BlockSpec((1, tn), lambda i, j: (0, j)),    # gamma
                    pl.BlockSpec((1, tn), lambda i, j: (0, j)),    # beta
                    pl.BlockSpec((1, tn), lambda i, j: (0, j)),    # b
                    pl.BlockSpec((1, tn), lambda i, j: (0, j)),    # b_i
                ],
                out_specs=pl.BlockSpec((tm, tn), lambda i, j: (i, j)),
            ),
            compiler_params=pltpu.CompilerParams(
                dimension_semantics=("parallel", "parallel"),
                vmem_limit_bytes=32 * 1024 * 1024,
            ),
        )(x, W, gamma, beta, b, b_i)
    else:
        grid = (Np // tm, Cp // tn, nk)
        out = pl.pallas_call(
            adafm_fc_kernel_multi_k,
            out_shape=out_shape,
            grid_spec=pltpu.PrefetchScalarGridSpec(
                num_scalar_prefetch=0,
                grid=grid,
                in_specs=[
                    pl.BlockSpec((tm, tk), lambda i, j, k: (i, k)),   # x
                    pl.BlockSpec((tn, tk), lambda i, j, k: (j, k)),   # W (as stored)
                    pl.BlockSpec((1, tn), lambda i, j, k: (0, j)),    # gamma
                    pl.BlockSpec((1, tn), lambda i, j, k: (0, j)),    # beta
                    pl.BlockSpec((1, tn), lambda i, j, k: (0, j)),    # b
                    pl.BlockSpec((1, tn), lambda i, j, k: (0, j)),    # b_i
                ],
                out_specs=pl.BlockSpec((tm, tn), lambda i, j, k: (i, j)),
                scratch_shapes=[
                    pltpu.VMEM((tm, tn), jnp.float32),   # matmul accumulator
                    pltpu.VMEM((tm, 1), jnp.float32),    # rowsum(x) accumulator
                ],
            ),
            compiler_params=pltpu.CompilerParams(
                dimension_semantics=("parallel", "parallel", "arbitrary"),
                vmem_limit_bytes=32 * 1024 * 1024,
            ),
        )(x, W, gamma, beta, b, b_i)

    if (Np, Cp) != (N, C):
        out = out[:N, :C]
    return out


class AdaFMFC:
    """JAX mirror of AdaFM_fc: holds gamma/beta and the global snapshots."""

    def __init__(self, in_channel):
        self.gamma = jnp.ones((1, in_channel), jnp.float32)
        self.beta = jnp.zeros((1, in_channel), jnp.float32)
        self.global_gamma = []
        self.global_beta = []

    def forward(self, input=0, W=0, b=0, b_i=0, task_id=-1, UPDATE_GLOBAL=False,
                compute_dtype=None):
        if not UPDATE_GLOBAL:
            if task_id >= 0:
                g = self.global_gamma[task_id]
                bt = self.global_beta[task_id]
            else:  # task_id == -1
                g = self.gamma
                bt = self.beta
            # is_use_bias == True -> both branches add b and b_i.
            return adafm_fc_forward(input, W, g, bt, b, b_i,
                                    compute_dtype=compute_dtype)
        else:
            # my_copy(): detached value copy (host-side bookkeeping, no kernel).
            self.global_gamma.append(self.gamma * 1.0)
            self.global_beta.append(self.beta * 1.0)
            return None


if __name__ == "__main__":
    key = jax.random.PRNGKey(0)
    ks = jax.random.split(key, 10)

    # --- small demo shapes (fc layer): batch=4, in_features=32, out=16 ---
    N, K, C = 4, 32, 16
    x = jax.random.normal(ks[0], (N, K), jnp.float32)
    W = jax.random.normal(ks[1], (C, K), jnp.float32)   # nn.Linear-style weight
    b = jax.random.normal(ks[2], (1, C), jnp.float32)
    b_i = jax.random.normal(ks[3], (1, C), jnp.float32)

    mod = AdaFMFC(in_channel=C)
    # Non-trivial gamma/beta so the modulation path is actually exercised.
    mod.gamma = 1.0 + 0.1 * jax.random.normal(ks[4], (1, C), jnp.float32)
    mod.beta = 0.1 * jax.random.normal(ks[5], (1, C), jnp.float32)

    # task_id == -1 path (single-K fast path kernel)
    out = jax.block_until_ready(mod.forward(input=x, W=W, b=b, b_i=b_i, task_id=-1))
    ref = x @ (W.T * mod.gamma + mod.beta) + b + b_i
    assert jnp.allclose(out, ref, atol=1e-4, rtol=1e-5), float(jnp.max(jnp.abs(out - ref)))

    # UPDATE_GLOBAL then task_id == 0 path (snapshotted gamma/beta)
    mod.forward(UPDATE_GLOBAL=True)
    out0 = jax.block_until_ready(mod.forward(input=x, W=W, b=b, b_i=b_i, task_id=0))
    assert jnp.allclose(out0, ref, atol=1e-4, rtol=1e-5)

    # --- multi-tile K-reduction check with bf16 MXU operands, f32 accumulate ---
    N2, K2, C2 = 64, 1024, 256
    x2 = jax.random.normal(ks[6], (N2, K2), jnp.float32)
    W2 = jax.random.normal(ks[7], (C2, K2), jnp.float32)
    g2 = 1.0 + 0.1 * jax.random.normal(ks[8], (1, C2), jnp.float32)
    bt2 = 0.1 * jax.random.normal(ks[9], (1, C2), jnp.float32)
    b2 = jnp.zeros((1, C2), jnp.float32)
    b2_i = jnp.ones((1, C2), jnp.float32) * 0.5

    out2 = jax.block_until_ready(
        adafm_fc_forward(x2, W2, g2, bt2, b2, b2_i, compute_dtype=jnp.bfloat16))
    xb = x2.astype(jnp.bfloat16).astype(jnp.float32)
    Wb = W2.astype(jnp.bfloat16).astype(jnp.float32)
    ref2 = xb @ (Wb.T * g2 + bt2) + b2 + b2_i
    assert jnp.allclose(out2, ref2, atol=5e-2, rtol=1e-2), float(jnp.max(jnp.abs(out2 - ref2)))

    print("KERNEL_OK")
</pallas_src>

<mosaic_0001>
module attributes {stable_mosaic.version = 11 : i64} {
  func.func @adafm_fc_kernel_single_k(%arg0: i32, %arg1: i32, %arg2: memref<16x128xf32, #tpu.memory_space<vmem>>, %arg3: memref<128x128xf32, #tpu.memory_space<vmem>>, %arg4: memref<1x128xf32, #tpu.memory_space<vmem>>, %arg5: memref<1x128xf32, #tpu.memory_space<vmem>>, %arg6: memref<1x128xf32, #tpu.memory_space<vmem>>, %arg7: memref<1x128xf32, #tpu.memory_space<vmem>>, %arg8: memref<16x128xf32, #tpu.memory_space<vmem>>) attributes {dimension_semantics = [#tpu.dimension_semantics<parallel>, #tpu.dimension_semantics<parallel>], iteration_bounds = array<i64: 1, 1>, scalar_prefetch = 0 : i64, scratch_operands = 0 : i64, tpu.core_type = #tpu.core_type<tc>, window_params = [{transform_indices = @transform_0, window_bounds = array<i64: 16, 128>}, {transform_indices = @transform_1, window_bounds = array<i64: 128, 128>}, {transform_indices = @transform_2, window_bounds = array<i64: 1, 128>}, {transform_indices = @transform_3, window_bounds = array<i64: 1, 128>}, {transform_indices = @transform_4, window_bounds = array<i64: 1, 128>}, {transform_indices = @transform_5, window_bounds = array<i64: 1, 128>}, {transform_indices = @transform_6, window_bounds = array<i64: 16, 128>}]} {
    %c0 = arith.constant 0 : index
    %c0_0 = arith.constant 0 : index
    %0 = vector.load %arg2[%c0, %c0_0] : memref<16x128xf32, #tpu.memory_space<vmem>>, vector<16x128xf32>
    %c0_1 = arith.constant 0 : index
    %c0_2 = arith.constant 0 : index
    %1 = vector.load %arg3[%c0_1, %c0_2] : memref<128x128xf32, #tpu.memory_space<vmem>>, vector<128x128xf32>
    %c0_3 = arith.constant 0 : index
    %c0_4 = arith.constant 0 : index
    %2 = vector.load %arg4[%c0_3, %c0_4] : memref<1x128xf32, #tpu.memory_space<vmem>>, vector<1x128xf32>
    %c0_5 = arith.constant 0 : index
    %c0_6 = arith.constant 0 : index
    %3 = vector.load %arg5[%c0_5, %c0_6] : memref<1x128xf32, #tpu.memory_space<vmem>>, vector<1x128xf32>
    %c0_7 = arith.constant 0 : index
    %c0_8 = arith.constant 0 : index
    %4 = vector.load %arg6[%c0_7, %c0_8] : memref<1x128xf32, #tpu.memory_space<vmem>>, vector<1x128xf32>
    %c0_9 = arith.constant 0 : index
    %c0_10 = arith.constant 0 : index
    %5 = vector.load %arg7[%c0_9, %c0_10] : memref<1x128xf32, #tpu.memory_space<vmem>>, vector<1x128xf32>
    %6 = arith.addf %4, %5 : vector<1x128xf32>
    %cst = arith.constant dense<0.000000e+00> : vector<16x128xf32>
    %7 = tpu.matmul %0, %1, %cst {dimension_numbers = #tpu.dot_dimension_numbers<[1], [1], [0], [0], [0, 0, 1, 0], [], []>} : vector<16x128xf32>, vector<128x128xf32>, vector<16x128xf32> -> vector<16x128xf32>
    %cst_11 = arith.constant dense<0.000000e+00> : vector<16xf32>
    %8 = vector.multi_reduction <add>, %0, %cst_11 [1] : vector<16x128xf32> to vector<16xf32>
    %9 = vector.shape_cast %8 : vector<16xf32> to vector<16x1xf32>
    %10 = vector.broadcast %2 : vector<1x128xf32> to vector<16x128xf32>
    %11 = arith.mulf %7, %10 : vector<16x128xf32>
    %12 = vector.broadcast %9 : vector<16x1xf32> to vector<16x128xf32>
    %13 = vector.broadcast %3 : vector<1x128xf32> to vector<16x128xf32>
    %14 = arith.mulf %12, %13 : vector<16x128xf32>
    %15 = arith.addf %11, %14 : vector<16x128xf32>
    %16 = vector.broadcast %6 : vector<1x128xf32> to vector<16x128xf32>
    %17 = arith.addf %15, %16 : vector<16x128xf32>
    %c0_12 = arith.constant 0 : index
    %c0_13 = arith.constant 0 : index
    %18 = vector.load %arg8[%c0_12, %c0_13] : memref<16x128xf32, #tpu.memory_space<vmem>>, vector<16x128xf32>
    tpu.vector_store %arg8[%c0_12, %c0_13], %17 {strides = array<i32>} : memref<16x128xf32, #tpu.memory_space<vmem>>, vector<16x128xf32>,
    return
  }
  func.func @transform_0(%arg0: i32, %arg1: i32) -> (i32, i32) {
    %c0_i32 = arith.constant 0 : i32
    %c0_i32_0 = arith.constant 0 : i32
    return %arg0, %c0_i32 : i32, i32
  }
  func.func @transform_1(%arg0: i32, %arg1: i32) -> (i32, i32) {
    %c0_i32 = arith.constant 0 : i32
    %c0_i32_0 = arith.constant 0 : i32
    return %arg1, %c0_i32 : i32, i32
  }
  func.func @transform_2(%arg0: i32, %arg1: i32) -> (i32, i32) {
    %c0_i32 = arith.constant 0 : i32
    %c0_i32_0 = arith.constant 0 : i32
    return %c0_i32, %arg1 : i32, i32
  }
  func.func @transform_3(%arg0: i32, %arg1: i32) -> (i32, i32) {
    %c0_i32 = arith.constant 0 : i32
    %c0_i32_0 = arith.constant 0 : i32
    return %c0_i32, %arg1 : i32, i32
  }
  func.func @transform_4(%arg0: i32, %arg1: i32) -> (i32, i32) {
    %c0_i32 = arith.constant 0 : i32
    %c0_i32_0 = arith.constant 0 : i32
    return %c0_i32, %arg1 : i32, i32
  }
  func.func @transform_5(%arg0: i32, %arg1: i32) -> (i32, i32) {
    %c0_i32 = arith.constant 0 : i32
    %c0_i32_0 = arith.constant 0 : i32
    return %c0_i32, %arg1 : i32, i32
  }
  func.func @transform_6(%arg0: i32, %arg1: i32) -> (i32, i32) {
    %c0_i32 = arith.constant 0 : i32
    return %arg0, %arg1 : i32, i32
  }
}

</mosaic_0001>

<bundles_post_ra>
// kernel: tpu_custom_call.1
= control target key start
LH: loop header
LB: loop body
LE: loop exit
PB: predicated region body
PF: predicated region fallthrough
CT: control target
= control target key end

     0   :  { %11 = vsyncpa [#allocation3], 0  ;;  %s461_s0 = inlined_call_operand.hbm [shape: f32[16,128], index: 0, kind: input, shape index: {}]   ;;  %s462_s1 = inlined_call_operand.hbm [shape: f32[128,128], index: 1, kind: input, shape index: {}]   ;;  %s463_s2 = inlined_call_operand.vmem [shape: f32[1,128], index: 2, kind: input, shape index: {}]   ;;  %s464_s3 = inlined_call_operand.vmem [shape: f32[1,128], index: 3, kind: input, shape index: {}]   ;;  %s465_s4 = inlined_call_operand.vmem [shape: f32[1,128], index: 4, kind: input, shape index: {}]   ;;  %s466_s5 = inlined_call_operand.vmem [shape: f32[1,128], index: 5, kind: input, shape index: {}]   ;;  %s467_s6 = inlined_call_operand.hbm [shape: f32[16,128], index: 6, kind: output, shape index: {}]  }
   0x1   :  { %12 = vsyncpa [#allocation6], 0 }
   0x2   :  { %13 = vsyncpa [#allocation4], 0  ;;  %s364_s21 = smov [#allocation2]   ;;  %s292_s25 = scalar_lea.hbm %s461_s0, 256 }
   0x3   :  { %s19_s22 = sshll.u32 %s364_s21, 4  ;;  %p293_p0 = scmp.ne.s32.totalorder %s461_s0, %s292_s25  ;;  %s20_s22 = int_to_ptr.vmem [resolvable:$true] %s19_s22 }
   0x4   :  { %p296_p1 = scmp.lt.u32.totalorder %s292_s25, %s461_s0 }
   0x6   :  { %p298_p2 = pnand %p296_p1, %p293_p0 }
   0x8   :  { %301 = shalt.err (!%p298_p2)
}
   0x9   :  { %s302_s30 = scalar_lea.vmem %s20_s22, 256  ;;  %p307_p4 = scmp.lt.s32.totalorder %s20_s22, %s20_s22 }
   0xa   :  { %p303_p3 = scmp.ne.s32.totalorder %s20_s22, %s302_s30  ;;  %p308_p5 = scmp.lt.s32.totalorder %s302_s30, %s302_s30 }
   0xc   :  { %p309_p6 = por %p308_p5, %p307_p4 }
   0xe   :  { %p310_p7 = pnand %p309_p6, %p303_p3 }
  0x10   :  { %313 = shalt.err (!%p310_p7)
}
  0x11   :  { %s365_s7 = smov 128   ;;  %s366_s8 = smov 8  }
  0x12   :  { %25 = dma.hbm_to_vmem [thread:$0]  %s461_s0, 256, %s20_s22, [#allocation3], %s365_s7, %s365_s7, %s366_s8  }
  0x13   :  { %s367_s11 = smov [#allocation5]   ;;  %s314_s15 = scalar_lea.hbm %s462_s1, 2048 }
  0x14   :  { %s31_s12 = sshll.u32 %s367_s11, 4  ;;  %p315_p8 = scmp.ne.s32.totalorder %s462_s1, %s314_s15  ;;  %s32_s12 = int_to_ptr.vmem [resolvable:$true] %s31_s12 }
  0x15   :  { %p318_p9 = scmp.lt.u32.totalorder %s314_s15, %s462_s1 }
  0x17   :  { %p320_p10 = pnand %p318_p9, %p315_p8 }
  0x19   :  { %323 = shalt.err (!%p320_p10)
}
  0x1a   :  { %s324_s20 = scalar_lea.vmem %s32_s12, 2048  ;;  %p329_p12 = scmp.lt.s32.totalorder %s32_s12, %s32_s12 }
  0x1b   :  { %p325_p11 = scmp.ne.s32.totalorder %s32_s12, %s324_s20  ;;  %p330_p13 = scmp.lt.s32.totalorder %s324_s20, %s324_s20 }
  0x1d   :  { %p331_p0 = por %p330_p13, %p329_p12 }
  0x1f   :  { %p332_p1 = pnand %p331_p0, %p325_p11 }
  0x21   :  { %335 = shalt.err (!%p332_p1)
}
  0x22   :  { %37 = dma.hbm_to_vmem [thread:$0]  %s462_s1, 2048, %s32_s12, [#allocation6], %s365_s7, %s365_s7, %s366_s8  }
  0x23   :  { %358 = dma.done.wait [#allocation3], 256  }
  0x24   :  { %359 = vsyncadd [#allocation3], 4294967040 }
  0x25   :  { %360 = dma.done.wait [#allocation6], 2048  }
  0x26   :  { %361 = vsyncadd [#allocation6], 4294965248  ;;  %v54_v0 = vld [vmem:[#allocation5] sm:$0xff]  ;;  %v55_v1 = vld [vmem:[#allocation5 + $0x8] sm:$0xff]  ;;  %v173_v26 = vlaneseq }
  0x27   :  { %v56_v2 = vld [vmem:[#allocation5 + $0x10] sm:$0xff]  ;;  %v255_v3 = vpack.c.bf16 %v55_v1, %v54_v0  ;;  %v57_v4 = vld [vmem:[#allocation5 + $0x18] sm:$0xff]  ;;  %v58_v7 = vld [vmem:[#allocation5 + $0x20] sm:$0xff] }
  0x28   :  { %v259_v5 = vpack.c.bf16 %v57_v4, %v56_v2  ;;  %v52_v6 = vld [vmem:[#allocation2] sm:$0xff]  ;;  %v59_v8 = vld [vmem:[#allocation5 + $0x28] sm:$0xff]  ;;  %v53_v10 = vld [vmem:[#allocation2 + $0x8] sm:$0xff]  ;;  %v174_v28 = vshrl.u32 %v173_v26, 7 }
  0x29   :  { %256 = vmatprep.subr.bf16.mxu0 %v255_v3  ;;  %252 = vmatprep.mubr.f32.mxu0 %v52_v6  ;;  %v263_v9 = vpack.c.bf16 %v59_v8, %v58_v7  ;;  %v60_v11 = vld [vmem:[#allocation5 + $0x30] sm:$0xff]  ;;  %v61_v12 = vld [vmem:[#allocation5 + $0x38] sm:$0xff]  ;;  %v62_v14 = vld [vmem:[#allocation5 + $0x40] sm:$0xff] }
  0x2a   :  { %258 = vmatpush3.bf16.xpose.msra.mxu0 %v255_v3  ;;  %150 = vadd.xlane.f32.xlu0 %v52_v6  ;;  %v267_v13 = vpack.c.bf16 %v61_v12, %v60_v11  ;;  %v63_v15 = vld [vmem:[#allocation5 + $0x48] sm:$0xff]  ;;  %v64_v17 = vld [vmem:[#allocation5 + $0x50] sm:$0xff]  ;;  %v65_v18 = vld [vmem:[#allocation5 + $0x58] sm:$0xff]  ;;  %v175_v33 = vsub.s32 0, %v174_v28 }
  0x2b   :  { %260 = vmatprep.subr.bf16.mxu0 %v259_v5  ;;  %v271_v16 = vpack.c.bf16 %v63_v15, %v62_v14  ;;  %v275_v19 = vpack.c.bf16 %v65_v18, %v64_v17  ;;  %v66_v20 = vld [vmem:[#allocation5 + $0x60] sm:$0xff]  ;;  %v67_v21 = vld [vmem:[#allocation5 + $0x68] sm:$0xff]  ;;  %v68_v23 = vld [vmem:[#allocation5 + $0x70] sm:$0xff] }
  0x2c   :  { %v279_v22 = vpack.c.bf16 %v67_v21, %v66_v20  ;;  %v69_v24 = vld [vmem:[#allocation5 + $0x78] sm:$0xff]  ;;  %v72_v29 = vld [vmem:[%s465_s4] sm:$0x1]  ;;  %s368_s4 = smov [#allocation7]  }
  0x2d   :  { %v283_v25 = vpack.c.bf16 %v69_v24, %v68_v23  ;;  %v73_v30 = vld [vmem:[%s466_s5] sm:$0x1]  ;;  %s187_s5 = sshll.u32 %s368_s4, 4  ;;  %s188_s5 = int_to_ptr.vmem [resolvable:$true] %s187_s5 }
  0x2e   :  { %152 = vadd.xlane.f32.xlu0 %v53_v10  ;;  %v74_v32 = vadd.f32 %v73_v30, %v72_v29  ;;  %v201_v34 = vld [vmem:[%s464_s3] ss:$0 sm:$0xff]  ;;  %s336_s3 = scalar_lea.vmem %s188_s5, 256  ;;  %p341_p3 = scmp.lt.s32.totalorder %s188_s5, %s188_s5 }
  0x2f   :  { %v200_v35 = vld [vmem:[%s463_s2] ss:$0 sm:$0xff]  ;;  %p337_p2 = scmp.ne.s32.totalorder %s188_s5, %s336_s3  ;;  %p342_p4 = scmp.lt.s32.totalorder %s336_s3, %s336_s3 }
  0x30   :  { %v176_v39 = vrot.slane %v74_v32, %v175_v33 }
  0x31   :  { %p343_p5 = por %p342_p4, %p341_p3 }
  0x32   :  { %262 = vmatpush3.bf16.xpose.msra.mxu0 %v259_v5 }
  0x33   :  { %264 = vmatprep.subr.bf16.mxu0 %v263_v9  ;;  %p344_p6 = pnand %p343_p5, %p337_p2 }
  0x3a   :  { %266 = vmatpush3.bf16.xpose.msra.mxu0 %v263_v9 }
  0x3b   :  { %268 = vmatprep.subr.bf16.mxu0 %v267_v13 }
  0x42   :  { %270 = vmatpush3.bf16.xpose.msra.mxu0 %v267_v13 }
  0x43   :  { %272 = vmatprep.subr.bf16.mxu0 %v271_v16 }
  0x4a   :  { %274 = vmatpush3.bf16.xpose.msra.mxu0 %v271_v16 }
  0x4b   :  { %276 = vmatprep.subr.bf16.mxu0 %v275_v19 }
  0x52   :  { %278 = vmatpush3.bf16.xpose.msra.mxu0 %v275_v19 }
  0x53   :  { %280 = vmatprep.subr.bf16.mxu0 %v279_v22 }
  0x5a   :  { %282 = vmatpush3.bf16.xpose.msra.mxu0 %v279_v22 }
  0x5b   :  { %284 = vmatprep.subr.bf16.mxu0 %v283_v25 }
  0x62   :  { %286 = vmatpush3.bf16.xpose.msra.mxu0 %v283_v25 }
  0x69   :  { %253 = vmatmul.mubr.f32.vlgmr.msra.gmra.mrb[0].mxu0 %v53_v10 }
  0xb7   :  { %v151_v27 = vpop.xlane.xlu0 %150 }
  0xb8   :  { %v168_v41 = vmul.f32 %v201_v34, %v151_v27 }
  0xbb   :  { %v153_v31 = vpop.xlane.xlu0 %152 }
  0xbc   :  { %v169_v36 = vmul.f32 %v201_v34, %v153_v31 }
 0x13c   :  { %v254_v37 = vpop.f32.mrb[0].mxu0 }
 0x13d   :  { %v161_v38 = vmul.f32 %v254_v37, %v200_v35  ;;  %v141_v40 = vpop.f32.mrb[1].mxu0 }
 0x13e   :  { %v160_v42 = vmul.f32 %v200_v35, %v141_v40 }
 0x13f   :  { %v171_v43 = vadd.f32 %v169_v36, %v161_v38 }
 0x140   :  { %v170_v44 = vadd.f32 %v168_v41, %v160_v42 }
 0x141   :  { %v179_v45 = vadd.f32 %v176_v39, %v171_v43 }
 0x142   :  { %v178_v46 = vadd.f32 %v176_v39, %v170_v44 }
 0x143   :  { %181 = vst [vmem:[#allocation7 + $0x8] sm:$0xff] %v179_v45 }
 0x144   :  { %180 = vst [vmem:[#allocation7] sm:$0xff] %v178_v46 }
 0x145   :  { %347 = shalt.err (!%p344_p6)
}
 0x146   :  { %s348_s30 = scalar_lea.hbm %s467_s6, 256 }
 0x147   :  { %p349_p7 = scmp.ne.s32.totalorder %s467_s6, %s348_s30  ;;  %p352_p8 = scmp.lt.u32.totalorder %s348_s30, %s467_s6 }
 0x149   :  { %p354_p9 = pnand %p352_p8, %p349_p7 }
 0x14b   :  { %357 = shalt.err (!%p354_p9)
}
 0x14c   :  { %193 = dma.vmem_to_hbm [thread:$0]  %s188_s5, 256, %s467_s6, [#allocation4], %s365_s7, %s365_s7, %s366_s8  }
 0x14d   :  { %362 = dma.done.wait [#allocation4], 256  }
 0x14e   :  { %363 = vsyncadd [#allocation4], 4294967040 }
 0x14f   :  { %197 = vsyncpa [#allocation3], 1 }
 0x150   :  { %198 = vsyncpa [#allocation6], 1 }
 0x151   :  { %199 = vsyncpa [#allocation4], 1 }

</bundles_post_ra>
